<compile_context>
chip_gen: v7x
topology: tpu7x:2x2x1
jax: 0.10.0
libtpu: 0.0.40
codegen_flags: <defaults>
</compile_context>

<pallas_src>
import math
import functools

import jax
import jax.numpy as jnp
import numpy as np
from jax.experimental import pallas as pl
from jax.experimental.pallas import tpu as pltpu


# ----------------------------- parameter setup (glue, plain JAX) -------------
def make_positional_encoding_table(d_model: int, max_len: int) -> jnp.ndarray:
    """Builds the pe buffer exactly like the PyTorch __init__: [max_len, 1, d_model]."""
    position = jnp.arange(max_len, dtype=jnp.float32)[:, None]                  # [max_len, 1]
    div_term = jnp.exp(
        jnp.arange(0, d_model, 2, dtype=jnp.float32) * (-math.log(10000.0) / d_model)
    )                                                                            # [d_model/2]
    pe = jnp.zeros((max_len, 1, d_model), dtype=jnp.float32)
    pe = pe.at[:, 0, 0::2].set(jnp.sin(position * div_term))
    pe = pe.at[:, 0, 1::2].set(jnp.cos(position * div_term))
    return pe


# ----------------------------- Pallas kernels --------------------------------
def _pe_add_kernel(x_ref, pe_ref, o_ref):
    # x_ref: (tS, B, D); pe_ref: (tS, D) broadcast over the batch axis.
    y = x_ref[...].astype(jnp.float32) + pe_ref[...][:, None, :]
    o_ref[...] = y.astype(o_ref.dtype)


def _pe_add_dropout_kernel(x_ref, pe_ref, u_ref, o_ref, *, p: float):
    # Inverted dropout: keep with prob (1-p), scale kept values by 1/(1-p).
    # u_ref holds uniforms in [0, 1) with the same block layout as x.
    y = x_ref[...].astype(jnp.float32) + pe_ref[...][:, None, :]
    keep = u_ref[...] >= jnp.float32(p)
    y = jnp.where(keep, y * jnp.float32(1.0 / (1.0 - p)), jnp.zeros_like(y))
    o_ref[...] = y.astype(o_ref.dtype)


# ----------------------------- wrapper ----------------------------------------
def _choose_tile_s(S: int, B: int, D: int, itemsize: int,
                   target_bytes: int = 2 << 20) -> int:
    """Pick a sequence-tile so one x tile is ~2 MiB (safe on v5e/v6e/v7x with
    double-buffered in+out blocks), rounded to a multiple of 8 sublanes."""
    rows = target_bytes // max(1, B * D * itemsize)
    if rows >= S:
        return S                      # full extent -> always layout-legal
    rows = max(8, (rows // 8) * 8)    # keep (8, 128) tiling constraint happy
    return min(rows, S)


def positional_encoding_forward(x: jnp.ndarray,
                                pe: jnp.ndarray,
                                *,
                                dropout_p: float = 0.1,
                                training: bool = True,
                                rng_key=None) -> jnp.ndarray:
    """x: [S, B, D]; pe: [max_len, 1, D].  Returns dropout(x + pe[:S])."""
    S, B, D = x.shape
    pe_s = pe[:S, 0, :].astype(jnp.float32)          # [S, D]  (like self.pe[:x.size(0)])

    tS = _choose_tile_s(S, B, D, x.dtype.itemsize)
    grid = (pl.cdiv(S, tS),)

    x_spec = pl.BlockSpec((tS, B, D), lambda i: (i, 0, 0))
    u_spec = pl.BlockSpec((tS, B, D), lambda i: (i, 0, 0))
    pe_spec = pl.BlockSpec((tS, D), lambda i: (i, 0))
    out_spec = pl.BlockSpec((tS, B, D), lambda i: (i, 0, 0))
    out_shape = jax.ShapeDtypeStruct((S, B, D), x.dtype)
    cparams = pltpu.CompilerParams(dimension_semantics=("parallel",))

    use_dropout = training and dropout_p > 0.0
    if use_dropout and dropout_p >= 1.0:
        # Degenerate case: everything is dropped.
        return jnp.zeros_like(x)

    if not use_dropout:
        return pl.pallas_call(
            _pe_add_kernel,
            out_shape=out_shape,
            grid_spec=pltpu.PrefetchScalarGridSpec(
                num_scalar_prefetch=0,
                grid=grid,
                in_specs=[x_spec, pe_spec],
                out_specs=out_spec,
            ),
            compiler_params=cparams,
        )(x, pe_s)

    if rng_key is None:
        rng_key = jax.random.PRNGKey(0)
    u = jax.random.uniform(rng_key, (S, B, D), dtype=jnp.float32)

    kernel = functools.partial(_pe_add_dropout_kernel, p=float(dropout_p))
    return pl.pallas_call(
        kernel,
        out_shape=out_shape,
        grid_spec=pltpu.PrefetchScalarGridSpec(
            num_scalar_prefetch=0,
            grid=grid,
            in_specs=[x_spec, pe_spec, u_spec],
            out_specs=out_spec,
        ),
        compiler_params=cparams,
    )(x, pe_s, u)


# ----------------------------- demo / check ----------------------------------
if __name__ == "__main__":
    seq_len, batch, d_model = 16, 8, 128   # small, but lane-dense (D=128) and sublane-dense (B=8)
    max_len = 64                           # module default is 5000; shape-irrelevant here
    dropout_p = 0.1

    key = jax.random.PRNGKey(0)
    kx, kd = jax.random.split(key)
    x = jax.random.normal(kx, (seq_len, batch, d_model), dtype=jnp.float32)

    pe = make_positional_encoding_table(d_model, max_len)

    # Eval mode (dropout = identity): must match plain-JAX reference.
    out_eval = positional_encoding_forward(x, pe, dropout_p=dropout_p, training=False)
    jax.block_until_ready(out_eval)
    ref_eval = x + pe[:seq_len]
    np.testing.assert_allclose(np.asarray(out_eval), np.asarray(ref_eval),
                               rtol=1e-6, atol=1e-6)

    # Training mode: elements are either 0 or (x+pe)/(1-p).
    out_train = positional_encoding_forward(x, pe, dropout_p=dropout_p,
                                            training=True, rng_key=kd)
    jax.block_until_ready(out_train)
    out_np = np.asarray(out_train)
    ref_np = np.asarray(ref_eval) / (1.0 - dropout_p)
    kept = out_np != 0.0
    np.testing.assert_allclose(out_np[kept], ref_np[kept], rtol=1e-5, atol=1e-5)
    drop_frac = 1.0 - kept.mean()
    assert 0.0 <= drop_frac <= 0.5, f"implausible drop fraction {drop_frac}"

    print("KERNEL_OK")
</pallas_src>

<mosaic_0001>
module attributes {stable_mosaic.version = 11 : i64} {
  func.func @_pe_add_kernel(%arg0: i32, %arg1: memref<16x8x128xf32, #tpu.memory_space<vmem>>, %arg2: memref<16x128xf32, #tpu.memory_space<vmem>>, %arg3: memref<16x8x128xf32, #tpu.memory_space<vmem>>) attributes {dimension_semantics = [#tpu.dimension_semantics<parallel>], iteration_bounds = array<i64: 1>, scalar_prefetch = 0 : i64, scratch_operands = 0 : i64, tpu.core_type = #tpu.core_type<tc>, window_params = [{transform_indices = @transform_0, window_bounds = array<i64: 16, 8, 128>}, {transform_indices = @transform_1, window_bounds = array<i64: 16, 128>}, {transform_indices = @transform_2, window_bounds = array<i64: 16, 8, 128>}]} {
    %c0 = arith.constant 0 : index
    %c0_0 = arith.constant 0 : index
    %c0_1 = arith.constant 0 : index
    %0 = vector.load %arg1[%c0, %c0_0, %c0_1] : memref<16x8x128xf32, #tpu.memory_space<vmem>>, vector<16x8x128xf32>
    %c0_2 = arith.constant 0 : index
    %c0_3 = arith.constant 0 : index
    %1 = vector.load %arg2[%c0_2, %c0_3] : memref<16x128xf32, #tpu.memory_space<vmem>>, vector<16x128xf32>
    %2 = vector.shape_cast %1 : vector<16x128xf32> to vector<16x1x128xf32>
    %3 = vector.broadcast %2 : vector<16x1x128xf32> to vector<16x8x128xf32>
    %4 = arith.addf %0, %3 : vector<16x8x128xf32>
    %c0_4 = arith.constant 0 : index
    %c0_5 = arith.constant 0 : index
    %c0_6 = arith.constant 0 : index
    %5 = vector.load %arg3[%c0_4, %c0_5, %c0_6] : memref<16x8x128xf32, #tpu.memory_space<vmem>>, vector<16x8x128xf32>
    tpu.vector_store %arg3[%c0_4, %c0_5, %c0_6], %4 {strides = array<i32>} : memref<16x8x128xf32, #tpu.memory_space<vmem>>, vector<16x8x128xf32>,
    return
  }
  func.func @transform_0(%arg0: i32) -> (i32, i32, i32) {
    %c0_i32 = arith.constant 0 : i32
    %c0_i32_0 = arith.constant 0 : i32
    %c0_i32_1 = arith.constant 0 : i32
    return %arg0, %c0_i32, %c0_i32_0 : i32, i32, i32
  }
  func.func @transform_1(%arg0: i32) -> (i32, i32) {
    %c0_i32 = arith.constant 0 : i32
    %c0_i32_0 = arith.constant 0 : i32
    return %arg0, %c0_i32 : i32, i32
  }
  func.func @transform_2(%arg0: i32) -> (i32, i32, i32) {
    %c0_i32 = arith.constant 0 : i32
    %c0_i32_0 = arith.constant 0 : i32
    %c0_i32_1 = arith.constant 0 : i32
    return %arg0, %c0_i32, %c0_i32_0 : i32, i32, i32
  }
}

</mosaic_0001>

<bundles_post_ra>
// kernel: tpu_custom_call.1
= control target key start
LH: loop header
LB: loop body
LE: loop exit
PB: predicated region body
PF: predicated region fallthrough
CT: control target
= control target key end

     0   :  { %7 = vsyncpa [#allocation3], 0  ;;  %s466_s0 = inlined_call_operand.hbm [shape: f32[16,8,128], index: 0, kind: input, shape index: {}]   ;;  %s467_s1 = inlined_call_operand.hbm [shape: f32[16,128], index: 1, kind: input, shape index: {}]   ;;  %s468_s2 = inlined_call_operand.hbm [shape: f32[16,8,128], index: 2, kind: output, shape index: {}]  }
   0x1   :  { %8 = vsyncpa [#allocation6], 0 }
   0x2   :  { %9 = vsyncpa [#allocation4], 0  ;;  %s368_s9 = smov [#allocation2]   ;;  %s296_s13 = scalar_lea.hbm %s466_s0, 2048 }
   0x3   :  { %s15_s10 = sshll.u32 %s368_s9, 4  ;;  %p297_p0 = scmp.ne.s32.totalorder %s466_s0, %s296_s13  ;;  %s16_s10 = int_to_ptr.vmem [resolvable:$true] %s15_s10 }
   0x4   :  { %p300_p1 = scmp.lt.u32.totalorder %s296_s13, %s466_s0 }
   0x6   :  { %p302_p2 = pnand %p300_p1, %p297_p0 }
   0x8   :  { %305 = shalt.err (!%p302_p2)
}
   0x9   :  { %s306_s18 = scalar_lea.vmem %s16_s10, 2048  ;;  %p311_p4 = scmp.lt.s32.totalorder %s16_s10, %s16_s10 }
   0xa   :  { %p307_p3 = scmp.ne.s32.totalorder %s16_s10, %s306_s18  ;;  %p312_p5 = scmp.lt.s32.totalorder %s306_s18, %s306_s18 }
   0xc   :  { %p313_p6 = por %p312_p5, %p311_p4 }
   0xe   :  { %p314_p7 = pnand %p313_p6, %p307_p3 }
  0x10   :  { %317 = shalt.err (!%p314_p7)
}
  0x11   :  { %s369_s19 = smov 128   ;;  %s370_s20 = smov 8  }
  0x12   :  { %21 = dma.hbm_to_vmem [thread:$0]  %s466_s0, 2048, %s16_s10, [#allocation3], %s369_s19, %s369_s19, %s370_s20  }
  0x13   :  { %s371_s23 = smov [#allocation5]   ;;  %s318_s27 = scalar_lea.hbm %s467_s1, 256 }
  0x14   :  { %s27_s24 = sshll.u32 %s371_s23, 4  ;;  %p319_p8 = scmp.ne.s32.totalorder %s467_s1, %s318_s27  ;;  %s28_s24 = int_to_ptr.vmem [resolvable:$true] %s27_s24 }
  0x15   :  { %p322_p9 = scmp.lt.u32.totalorder %s318_s27, %s467_s1 }
  0x17   :  { %p324_p10 = pnand %p322_p9, %p319_p8 }
  0x19   :  { %327 = shalt.err (!%p324_p10)
}
  0x1a   :  { %s328_s4 = scalar_lea.vmem %s28_s24, 256  ;;  %p333_p12 = scmp.lt.s32.totalorder %s28_s24, %s28_s24 }
  0x1b   :  { %p329_p11 = scmp.ne.s32.totalorder %s28_s24, %s328_s4  ;;  %p334_p13 = scmp.lt.s32.totalorder %s328_s4, %s328_s4 }
  0x1d   :  { %p335_p0 = por %p334_p13, %p333_p12 }
  0x1f   :  { %p336_p1 = pnand %p335_p0, %p329_p11 }
  0x21   :  { %339 = shalt.err (!%p336_p1)
}
  0x22   :  { %33 = dma.hbm_to_vmem [thread:$0]  %s467_s1, 256, %s28_s24, [#allocation6], %s369_s19, %s369_s19, %s370_s20  }
  0x23   :  { %362 = dma.done.wait [#allocation3], 2048  }
  0x24   :  { %363 = vsyncadd [#allocation3], 4294965248 }
  0x25   :  { %364 = dma.done.wait [#allocation6], 256  }
  0x26   :  { %365 = vsyncadd [#allocation6], 4294967040  ;;  %v64_v0 = vlaneseq  ;;  %v372_v1 = vmov 1966171168   ;;  %v56_v6 = vld [vmem:[#allocation5] sm:$0xff]  ;;  %v57_v13 = vld [vmem:[#allocation5 + $0x8] sm:$0xff] }
  0x27   :  { %v62_v2 = vunpack.c.l.s4 %v372_v1  ;;  %v60_v9 = vcombine.high %v56_v6, %v56_v6  ;;  %v40_v14 = vld [vmem:[#allocation2] sm:$0xff]  ;;  %v109_v16 = vcombine.high %v57_v13, %v57_v13  ;;  %v41_v21 = vld [vmem:[#allocation2 + $0x8] sm:$0xff]  ;;  %v42_v22 = vld [vmem:[#allocation2 + $0x10] sm:$0xff]  ;;  %s373_s1 = smov [#allocation7]  }
  0x28   :  { %v65_v3 = vshrl.u32 %v64_v0, 7  ;;  %v44_v31 = vld [vmem:[#allocation2 + $0x20] sm:$0xff]  ;;  %v43_v32 = vld [vmem:[#allocation2 + $0x18] sm:$0xff]  ;;  %v45_v41 = vld [vmem:[#allocation2 + $0x28] sm:$0xff]  ;;  %s275_s6 = sshll.u32 %s373_s1, 4  ;;  %s276_s6 = int_to_ptr.vmem [resolvable:$true] %s275_s6 }
  0x29   :  { %v63_v4 = vunpack.c.0.s8 %v62_v2  ;;  %v48_v36 = vld [vmem:[#allocation2 + $0x40] sm:$0xff]  ;;  %v46_v42 = vld [vmem:[#allocation2 + $0x30] sm:$0xff]  ;;  %v49_v48 = vld [vmem:[#allocation2 + $0x48] sm:$0xff]  ;;  %s340_s7 = scalar_lea.vmem %s276_s6, 2048  ;;  %p345_p3 = scmp.lt.s32.totalorder %s276_s6, %s276_s6 }
  0x2a   :  { %v422_v8 = vsub.s32 0, %v65_v3  ;;  %v47_v50 = vld [vmem:[#allocation2 + $0x38] sm:$0xff]  ;;  %v50_v57 = vld [vmem:[#allocation2 + $0x50] sm:$0xff]  ;;  %v52_v2 = vld [vmem:[#allocation2 + $0x60] sm:$0xff]  ;;  %p341_p2 = scmp.ne.s32.totalorder %s276_s6, %s340_s7  ;;  %p346_p4 = scmp.lt.s32.totalorder %s340_s7, %s340_s7 }
  0x2b   :  { %v419_v5 = vsub.s32 %v63_v4, %v65_v3  ;;  %v51_v61 = vld [vmem:[#allocation2 + $0x58] sm:$0xff] }
  0x2c   :  { %p347_p5 = por %p346_p4, %p345_p3 }
  0x2d   :  { %v67_v7 = vrot.slane %v56_v6, %v419_v5  ;;  %v74_v12 = vrot.slane %v60_v9, %v419_v5  ;;  %v116_v15 = vrot.slane %v57_v13, %v419_v5  ;;  %v123_v26 = vrot.slane %v109_v16, %v419_v5  ;;  %v55_v16 = vld [vmem:[#allocation2 + $0x78] sm:$0xff] }
  0x2e   :  { %p348_p6 = pnand %p347_p5, %p341_p2 }
  0x2f   :  { %v83_v10 = vrot.slane %v67_v7, %v419_v5  ;;  %v75_v11 = vcombine.high %v67_v7, %v67_v7  ;;  %v90_v20 = vrot.slane %v74_v12, %v419_v5  ;;  %v76_v23 = vcombine.high %v74_v12, %v74_v12 }
  0x30   :  { %v132_v24 = vrot.slane %v116_v15, %v419_v5  ;;  %v124_v25 = vcombine.high %v116_v15, %v116_v15  ;;  %v139_v62 = vrot.slane %v123_v26, %v419_v5  ;;  %v125_v63 = vcombine.high %v123_v26, %v123_v26 }
  0x31   :  { %v161_v17 = vrot.slane %v83_v10, %v422_v8  ;;  %v97_v18 = vrot.slane %v75_v11, %v419_v5  ;;  %v105_v19 = vcombine.high %v83_v10, %v83_v10  ;;  %v177_v33 = vrot.slane %v90_v20, %v422_v8  ;;  %v53_v10 = vld [vmem:[#allocation2 + $0x68] sm:$0xff]  ;;  %v54_v11 = vld [vmem:[#allocation2 + $0x70] sm:$0xff] }
  0x32   :  { %v104_v34 = vrot.slane %v76_v23, %v419_v5  ;;  %v106_v35 = vcombine.high %v90_v20, %v90_v20  ;;  %v193_v37 = vrot.slane %v132_v24, %v422_v8  ;;  %v146_v43 = vrot.slane %v124_v25, %v419_v5 }
  0x33   :  { %v238_v27 = vadd.f32 %v161_v17, %v40_v14  ;;  %v165_v28 = vrot.slane %v97_v18, %v422_v8  ;;  %v169_v29 = vrot.slane %v105_v19, %v422_v8  ;;  %v107_v30 = vcombine.high %v97_v18, %v97_v18 }
  0x34   :  { %v242_v44 = vadd.f32 %v177_v33, %v44_v31  ;;  %v181_v45 = vrot.slane %v104_v34, %v422_v8  ;;  %v185_v46 = vrot.slane %v106_v35, %v422_v8  ;;  %v108_v47 = vcombine.high %v104_v34, %v104_v34 }
  0x35   :  { %254 = vst [vmem:[#allocation7] sm:$0xff] %v238_v27  ;;  %v239_v38 = vadd.f32 %v165_v28, %v41_v21  ;;  %v240_v39 = vadd.f32 %v169_v29, %v42_v22  ;;  %v173_v40 = vrot.slane %v107_v30, %v422_v8  ;;  %v246_v51 = vadd.f32 %v193_v37, %v48_v36 }
  0x36   :  { %v197_v52 = vrot.slane %v146_v43, %v422_v8  ;;  %v154_v53 = vcombine.high %v132_v24, %v132_v24  ;;  %258 = vst [vmem:[#allocation7 + $0x20] sm:$0xff] %v242_v44  ;;  %v243_v54 = vadd.f32 %v181_v45, %v45_v41  ;;  %v244_v55 = vadd.f32 %v185_v46, %v46_v42 }
  0x37   :  { %255 = vst [vmem:[#allocation7 + $0x8] sm:$0xff] %v239_v38  ;;  %256 = vst [vmem:[#allocation7 + $0x10] sm:$0xff] %v240_v39  ;;  %v241_v49 = vadd.f32 %v173_v40, %v43_v32  ;;  %v189_v56 = vrot.slane %v108_v47, %v422_v8  ;;  %v156_v58 = vcombine.high %v146_v43, %v146_v43 }
  0x38   :  { %262 = vst [vmem:[#allocation7 + $0x40] sm:$0xff] %v246_v51  ;;  %v247_v59 = vadd.f32 %v197_v52, %v49_v48  ;;  %v201_v60 = vrot.slane %v154_v53, %v422_v8  ;;  %259 = vst [vmem:[#allocation7 + $0x28] sm:$0xff] %v243_v54  ;;  %v209_v4 = vrot.slane %v139_v62, %v422_v8 }
  0x39   :  { %257 = vst [vmem:[#allocation7 + $0x18] sm:$0xff] %v241_v49  ;;  %260 = vst [vmem:[#allocation7 + $0x30] sm:$0xff] %v244_v55  ;;  %v245_v0 = vadd.f32 %v189_v56, %v47_v50  ;;  %v205_v1 = vrot.slane %v156_v58, %v422_v8  ;;  %v153_v6 = vrot.slane %v125_v63, %v419_v5 }
  0x3a   :  { %263 = vst [vmem:[#allocation7 + $0x48] sm:$0xff] %v247_v59  ;;  %v248_v3 = vadd.f32 %v201_v60, %v50_v57  ;;  %v155_v7 = vcombine.high %v139_v62, %v139_v62  ;;  %v250_v12 = vadd.f32 %v209_v4, %v52_v2 }
  0x3b   :  { %261 = vst [vmem:[#allocation7 + $0x38] sm:$0xff] %v245_v0  ;;  %v249_v9 = vadd.f32 %v205_v1, %v51_v61  ;;  %v213_v13 = vrot.slane %v153_v6, %v422_v8  ;;  %v157_v15 = vcombine.high %v153_v6, %v153_v6 }
  0x3c   :  { %264 = vst [vmem:[#allocation7 + $0x50] sm:$0xff] %v248_v3  ;;  %v217_v14 = vrot.slane %v155_v7, %v422_v8  ;;  %266 = vst [vmem:[#allocation7 + $0x60] sm:$0xff] %v250_v12 }
  0x3d   :  { %265 = vst [vmem:[#allocation7 + $0x58] sm:$0xff] %v249_v9  ;;  %v251_v17 = vadd.f32 %v213_v13, %v53_v10  ;;  %v221_v5 = vrot.slane %v157_v15, %v422_v8 }
  0x3e   :  { %v252_v18 = vadd.f32 %v217_v14, %v54_v11 }
  0x3f   :  { %267 = vst [vmem:[#allocation7 + $0x68] sm:$0xff] %v251_v17  ;;  %v253_v19 = vadd.f32 %v221_v5, %v55_v16 }
  0x40   :  { %268 = vst [vmem:[#allocation7 + $0x70] sm:$0xff] %v252_v18 }
  0x41   :  { %269 = vst [vmem:[#allocation7 + $0x78] sm:$0xff] %v253_v19 }
  0x42   :  { %351 = shalt.err (!%p348_p6)
}
  0x43   :  { %s352_s10 = scalar_lea.hbm %s468_s2, 2048 }
  0x44   :  { %p353_p7 = scmp.ne.s32.totalorder %s468_s2, %s352_s10  ;;  %p356_p8 = scmp.lt.u32.totalorder %s352_s10, %s468_s2 }
  0x46   :  { %p358_p9 = pnand %p356_p8, %p353_p7 }
  0x48   :  { %361 = shalt.err (!%p358_p9)
}
  0x49   :  { %281 = dma.vmem_to_hbm [thread:$0]  %s276_s6, 2048, %s468_s2, [#allocation4], %s369_s19, %s369_s19, %s370_s20  }
  0x4a   :  { %366 = dma.done.wait [#allocation4], 2048  }
  0x4b   :  { %367 = vsyncadd [#allocation4], 4294965248 }
  0x4c   :  { %285 = vsyncpa [#allocation3], 1 }
  0x4d   :  { %286 = vsyncpa [#allocation6], 1 }
  0x4e   :  { %287 = vsyncpa [#allocation4], 1 }

</bundles_post_ra>
